<compile_context>
chip_gen: v6e
topology: v6e:2x2x1
jax: 0.10.0
libtpu: 0.0.40
codegen_flags: <defaults>
</compile_context>

<pallas_src>
import functools

import jax
import jax.numpy as jnp
from jax import lax
from jax.experimental import pallas as pl
from jax.experimental.pallas import tpu as pltpu


def _round_up(x, m):
    return -(-x // m) * m


# ----------------------------------------------------------------------------
# Fused kernel: backbone conv+ReLU+pool  ->  classifier heads (epilogue).
# ----------------------------------------------------------------------------
def _fused_forward_kernel(x_ref, wbb_ref, bbb_ref, wcat_ref, bcat_ref,
                          wftrow_ref, bft_ref, logit_ref, ft_ref, acc_ref, *,
                          inv_np, tp, p_valid, npad, nattr, c, needs_mask):
    p = pl.program_id(1)

    @pl.when(p == 0)
    def _init():
        acc_ref[...] = jnp.zeros_like(acc_ref)

    x = x_ref[0].astype(jnp.float32)          # (Cin, TP)  pixel tile, channel-major
    w = wbb_ref[...]                          # (Cfeat, Cin) f32
    b = bbb_ref[...]                          # (Cfeat, 1)
    cin = x.shape[0]

    # 1x1 conv as Cin broadcast FMAs on the VPU, lane-dense (Cfeat x TP).
    feat = w[:, 0:1] * x[0:1, :]
    for ci in range(1, cin):                  # static, tiny unrolled loop
        feat = feat + w[:, ci:ci + 1] * x[ci:ci + 1, :]
    feat = jnp.maximum(feat + b, 0.0)         # bias + backbone ReLU

    if needs_mask:
        lane = lax.broadcasted_iota(jnp.int32, feat.shape, 1)
        feat = jnp.where(p * tp + lane < p_valid, feat, 0.0)

    # Lane-dense accumulation (pure VPU).  The single cross-lane reduce is
    # deferred to the finalize (once per batch row), not done per tile.
    acc_ref[...] += feat

    @pl.when(p == pl.num_programs(1) - 1)
    def _finalize():
        # Global mean pool: one XLU lane-reduce + 1/P scale per batch row.
        pooled = jnp.sum(acc_ref[...], axis=1, keepdims=True) * inv_np  # (Cfeat,1)

        # pooled pushed once through the concatenated classifier weights:
        #   [ folded main-logits | attribute embedding ]   (exact f32, VPU+XLU)
        y = (jnp.sum(pooled * wcat_ref[...], axis=0, keepdims=True)
             + bcat_ref[...])                               # (1, NPAD + ACPAD)

        logit_ref[...] = y[:, :npad][None].astype(logit_ref.dtype)

        # logits_ft: per-attribute ReLU + Linear(c, 1), exact f32 on VPU/XLU.
        x_ft = jnp.maximum(y[:, npad:], 0.0)                # (1, ACPAD)
        prod = x_ft * wftrow_ref[...]                       # (1, ACPAD)
        lane = lax.broadcasted_iota(jnp.int32, (1, npad), 1)
        ft = bft_ref[...]                                   # (1, NPAD)
        for a in range(nattr):                              # static; nattr is small
            val = jnp.sum(prod[:, a * c:(a + 1) * c], axis=1, keepdims=True)
            ft = ft + jnp.where(lane == a, val, 0.0)
        ft_ref[...] = ft[None].astype(ft_ref.dtype)


def fused_network_forward(x_nchw, w_bb_t, b_bb_col, w_cat, b_cat,
                          w_ft_row, b_ft_p, *, nattr, c, npad):
    B, Cin, H, W = x_nchw.shape
    P = H * W
    Cfeat = w_bb_t.shape[0]
    x_r = x_nchw.reshape(B, Cin, P)           # free reshape: NCHW stays contiguous

    # Pixel-tile size: as many 128-lane columns as the VMEM budget allows
    # (double-buffered x tile + f32 cast + acc scratch + feat temps), capped
    # at 16K lanes and at the (128-padded) image size.
    xbytes = x_r.dtype.itemsize
    budget = 20 * 1024 * 1024                 # headroom under the 32 MiB scoped limit
    per_lane = 2 * Cin * xbytes + Cin * 4 + 3 * Cfeat * 4
    tp = max(128, min(16384, (budget // per_lane) // 128 * 128))
    tp = min(tp, _round_up(P, 128))
    grid_p = pl.cdiv(P, tp)
    needs_mask = (P % tp) != 0

    kernel = functools.partial(
        _fused_forward_kernel, inv_np=1.0 / P, tp=tp, p_valid=P, npad=npad,
        nattr=nattr, c=c, needs_mask=needs_mask)

    logits_p, ft_p = pl.pallas_call(
        kernel,
        out_shape=(jax.ShapeDtypeStruct((B, 1, npad), jnp.float32),
                   jax.ShapeDtypeStruct((B, 1, npad), jnp.float32)),
        grid_spec=pltpu.PrefetchScalarGridSpec(
            num_scalar_prefetch=0,
            grid=(B, grid_p),
            in_specs=[
                pl.BlockSpec((1, Cin, tp), lambda b, p: (b, 0, p)),
                pl.BlockSpec(w_bb_t.shape, lambda b, p: (0, 0)),
                pl.BlockSpec(b_bb_col.shape, lambda b, p: (0, 0)),
                pl.BlockSpec(w_cat.shape, lambda b, p: (0, 0)),
                pl.BlockSpec(b_cat.shape, lambda b, p: (0, 0)),
                pl.BlockSpec(w_ft_row.shape, lambda b, p: (0, 0)),
                pl.BlockSpec(b_ft_p.shape, lambda b, p: (0, 0)),
            ],
            out_specs=[pl.BlockSpec((1, 1, npad), lambda b, p: (b, 0, 0)),
                       pl.BlockSpec((1, 1, npad), lambda b, p: (b, 0, 0))],
            scratch_shapes=[pltpu.VMEM((Cfeat, tp), jnp.float32)],
        ),
        compiler_params=pltpu.CompilerParams(
            # TODO(synk): if B < 2 on v7x, split the pixel axis into an outer
            # parallel factor of 2 so both TensorCores get work.
            dimension_semantics=("parallel", "arbitrary"),
            vmem_limit_bytes=32 * 1024 * 1024,
        ),
    )(x_r, w_bb_t, b_bb_col, w_cat, b_cat, w_ft_row, b_ft_p)

    logits = logits_p.reshape(B, npad)[:, :nattr]
    logits_ft = ft_p.reshape(B, npad)[:, :nattr]
    return logits, logits_ft


# ----------------------------------------------------------------------------
# Synthetic backbone / classifier stand-ins + the Network forward.
# ----------------------------------------------------------------------------
class PallasNetwork:
    def __init__(self, key, *, cin, cfeat, c, nattr, number):
        self.number = number
        self.nattr = nattr
        self.c = c
        ks = jax.random.split(key, 8)
        s = 0.05
        hp = lax.Precision.HIGHEST
        # backbone: 1x1 conv Cin -> Cfeat (frozen in torch; fwd no-op)
        self.w_bb = jax.random.normal(ks[0], (cin, cfeat), jnp.float32) * s
        self.b_bb = jax.random.normal(ks[1], (cfeat,), jnp.float32) * s
        # classifier: per-attr embedding Cfeat -> c (stored as [Cfeat, nattr*c])
        self.w_emb = jax.random.normal(ks[2], (cfeat, nattr * c), jnp.float32) * s
        self.b_emb = jax.random.normal(ks[3], (nattr * c,), jnp.float32) * s
        # classifier main logits: one Linear(c, 1) per attribute
        self.w_cls = jax.random.normal(ks[4], (nattr, c), jnp.float32) * s
        self.b_cls = jax.random.normal(ks[5], (nattr,), jnp.float32) * s
        # Network.logits_ft: nn.ModuleList([nn.Linear(c, 1) for _ in range(nattr)])
        self.w_ft = jax.random.normal(ks[6], (nattr, c), jnp.float32) * s
        self.b_ft = jax.random.normal(ks[7], (nattr,), jnp.float32) * s

        # ---- one-time precomputed kernel-friendly parameter tensors ----
        self.w_bb_t = jnp.transpose(self.w_bb)               # (Cfeat, Cin)
        self.b_bb_col = self.b_bb.reshape(cfeat, 1)           # (Cfeat, 1)

        npad = _round_up(nattr, 128)
        acpad = _round_up(nattr * c, 128)
        self.npad = npad

        # Folded main-logits weights (embedding o Linear(c,1), no nonlinearity
        # between them, so the fold is exact).  f32-exact fold (HIGHEST).
        w_fold = jnp.einsum('fac,ac->fa', self.w_emb.reshape(cfeat, nattr, c),
                            self.w_cls, precision=hp)                # (Cfeat, A)
        b_fold = jnp.einsum('ac,ac->a', self.b_emb.reshape(nattr, c),
                            self.w_cls, precision=hp) + self.b_cls   # (A,)

        # Concatenated classifier weight: pooled goes through it exactly once.
        w_fold_p = jnp.pad(w_fold, ((0, 0), (0, npad - nattr)))       # (Cfeat, NPAD)
        w_emb_p = jnp.pad(self.w_emb, ((0, 0), (0, acpad - nattr * c)))
        self.w_cat = jnp.concatenate([w_fold_p, w_emb_p], axis=1)     # (Cfeat, NPAD+ACPAD)
        b_fold_p = jnp.pad(b_fold, (0, npad - nattr))
        b_emb_p = jnp.pad(self.b_emb, (0, acpad - nattr * c))
        self.b_cat = jnp.concatenate([b_fold_p, b_emb_p]).reshape(1, npad + acpad)

        # logits_ft head weights, flat lane row (per-attr lane reduce in-kernel).
        self.w_ft_row = jnp.pad(self.w_ft.reshape(1, nattr * c),
                                ((0, 0), (0, acpad - nattr * c)))      # (1, ACPAD)
        self.b_ft_p = jnp.pad(self.b_ft, (0, npad - nattr)).reshape(1, npad)

    # ---- Network.forward ----
    def forward(self, x, label=None, mode='train', epoch=0):
        # backbone + global mean pool + classifier + logits_ft heads, all in
        # one fused pallas_call (backbone params are frozen: fwd no-op).
        logits, logits_ft = fused_network_forward(
            x, self.w_bb_t, self.b_bb_col, self.w_cat, self.b_cat,
            self.w_ft_row, self.b_ft_p,
            nattr=self.nattr, c=self.c, npad=self.npad)

        if mode == 'train':
            if epoch > self.number:
                # TODO(synk): classifier.attri_Q.pop(batch) is an external
                # mutable feature queue; no clean Pallas equivalent. Fall back
                # to the current batch's (detached) features / labels.
                label_ft = label
            else:
                label_ft = label             # x_ft = x.detach(): same fwd value
            return ([logits], [logits_ft], label, label_ft)
        else:
            return ([logits_ft], label)


# ----------------------------------------------------------------------------
# Pure-JAX reference of the same forward (correctness cross-check).
# ----------------------------------------------------------------------------
def _reference_forward(net, x):
    B = x.shape[0]
    hp = lax.Precision.HIGHEST
    feat = jnp.einsum('bchw,cf->bhwf', x.astype(jnp.float32), net.w_bb,
                      precision=hp) + net.b_bb
    feat = jnp.maximum(feat, 0.0)
    pooled = jnp.mean(feat, axis=(1, 2))
    x_emb = (jnp.dot(pooled, net.w_emb, precision=hp)
             + net.b_emb).reshape(B, net.nattr, net.c)
    logits = jnp.einsum('bac,ac->ba', x_emb, net.w_cls, precision=hp) + net.b_cls
    x_ft = jnp.maximum(x_emb, 0.0)
    logits_ft = jnp.einsum('bac,ac->ba', x_ft, net.w_ft, precision=hp) + net.b_ft
    return logits, logits_ft


if __name__ == "__main__":
    key = jax.random.PRNGKey(0)
    k_x, k_lbl, k_par = jax.random.split(key, 3)

    B, Cin, H, W = 2, 4, 16, 16
    Cfeat, c, nattr = 32, 32, 4

    x = jax.random.normal(k_x, (B, Cin, H, W), jnp.float32)
    label = (jax.random.uniform(k_lbl, (B, nattr)) > 0.5).astype(jnp.float32)

    net = PallasNetwork(k_par, cin=Cin, cfeat=Cfeat, c=c, nattr=nattr, number=5)

    # train mode (epoch <= number branch)
    (logits_list, logits_ft_list, lab, lab_ft) = net.forward(
        x, label, mode='train', epoch=0)
    jax.block_until_ready(logits_list[0])
    jax.block_until_ready(logits_ft_list[0])
    assert logits_list[0].shape == (B, nattr)
    assert logits_ft_list[0].shape == (B, nattr)

    # eval mode
    (logits_ft_eval_list, lab_eval) = net.forward(x, label, mode='eval', epoch=0)
    jax.block_until_ready(logits_ft_eval_list[0])
    assert logits_ft_eval_list[0].shape == (B, nattr)

    # correctness cross-check vs. pure-JAX reference (tight f32 tolerance).
    ref_logits, ref_logits_ft = _reference_forward(net, x)
    assert jnp.allclose(logits_list[0], ref_logits, rtol=1e-5, atol=1e-6)
    assert jnp.allclose(logits_ft_list[0], ref_logits_ft, rtol=1e-5, atol=1e-6)
    assert jnp.allclose(logits_ft_eval_list[0], ref_logits_ft, rtol=1e-5, atol=1e-6)

    print("KERNEL_OK")
</pallas_src>

<mosaic_0001>
module attributes {stable_mosaic.version = 11 : i64} {
  func.func @_fused_forward_kernel(%arg0: i32, %arg1: i32, %arg2: memref<1x4x256xf32, #tpu.memory_space<vmem>>, %arg3: memref<32x4xf32, #tpu.memory_space<vmem>>, %arg4: memref<32x1xf32, #tpu.memory_space<vmem>>, %arg5: memref<32x256xf32, #tpu.memory_space<vmem>>, %arg6: memref<1x256xf32, #tpu.memory_space<vmem>>, %arg7: memref<1x128xf32, #tpu.memory_space<vmem>>, %arg8: memref<1x128xf32, #tpu.memory_space<vmem>>, %arg9: memref<1x1x128xf32, #tpu.memory_space<vmem>>, %arg10: memref<1x1x128xf32, #tpu.memory_space<vmem>>, %arg11: memref<32x256xf32, #tpu.memory_space<vmem>>) attributes {dimension_semantics = [#tpu.dimension_semantics<parallel>, #tpu.dimension_semantics<arbitrary>], iteration_bounds = array<i64: 2, 1>, scalar_prefetch = 0 : i64, scratch_operands = 1 : i64, tpu.core_type = #tpu.core_type<tc>, window_params = [{transform_indices = @transform_0, window_bounds = array<i64: 1, 4, 256>}, {pipeline_mode = #tpu.pipeline_mode<synchronous>, transform_indices = @transform_1, window_bounds = array<i64: 32, 4>}, {pipeline_mode = #tpu.pipeline_mode<synchronous>, transform_indices = @transform_2, window_bounds = array<i64: 32, 1>}, {pipeline_mode = #tpu.pipeline_mode<synchronous>, transform_indices = @transform_3, window_bounds = array<i64: 32, 256>}, {pipeline_mode = #tpu.pipeline_mode<synchronous>, transform_indices = @transform_4, window_bounds = array<i64: 1, 256>}, {pipeline_mode = #tpu.pipeline_mode<synchronous>, transform_indices = @transform_5, window_bounds = array<i64: 1, 128>}, {pipeline_mode = #tpu.pipeline_mode<synchronous>, transform_indices = @transform_6, window_bounds = array<i64: 1, 128>}, {transform_indices = @transform_7, window_bounds = array<i64: 1, 1, 128>}, {transform_indices = @transform_8, window_bounds = array<i64: 1, 1, 128>}]} {
    %c0_i32 = arith.constant 0 : i32
    %0 = arith.cmpi eq, %arg1, %c0_i32 : i32
    %1 = arith.extui %0 : i1 to i32
    %c0_i32_0 = arith.constant 0 : i32
    %2 = arith.cmpi ne, %1, %c0_i32_0 : i32
    scf.if %2 {
      %cst_13 = arith.constant 0.000000e+00 : f32
      %40 = vector.broadcast %cst_13 : f32 to vector<32x256xf32>
      %c0_14 = arith.constant 0 : index
      %c0_15 = arith.constant 0 : index
      %41 = vector.load %arg11[%c0_14, %c0_15] : memref<32x256xf32, #tpu.memory_space<vmem>>, vector<32x256xf32>
      tpu.vector_store %arg11[%c0_14, %c0_15], %40 {strides = array<i32>} : memref<32x256xf32, #tpu.memory_space<vmem>>, vector<32x256xf32>,
    } else {
    }
    %c0 = arith.constant 0 : index
    %c0_1 = arith.constant 0 : index
    %c0_2 = arith.constant 0 : index
    %3 = vector.load %arg2[%c0, %c0_1, %c0_2] : memref<1x4x256xf32, #tpu.memory_space<vmem>>, vector<1x4x256xf32>
    %4 = vector.shape_cast %3 : vector<1x4x256xf32> to vector<4x256xf32>
    %c0_3 = arith.constant 0 : index
    %c0_4 = arith.constant 0 : index
    %5 = vector.load %arg3[%c0_3, %c0_4] : memref<32x4xf32, #tpu.memory_space<vmem>>, vector<32x4xf32>
    %c0_5 = arith.constant 0 : index
    %c0_6 = arith.constant 0 : index
    %6 = vector.load %arg4[%c0_5, %c0_6] : memref<32x1xf32, #tpu.memory_space<vmem>>, vector<32x1xf32>
    %7 = vector.extract_strided_slice %5 {offsets = [0, 0], sizes = [32, 1], strides = [1, 1]} : vector<32x4xf32> to vector<32x1xf32>
    %8 = vector.extract_strided_slice %4 {offsets = [0, 0], sizes = [1, 256], strides = [1, 1]} : vector<4x256xf32> to vector<1x256xf32>
    %9 = vector.broadcast %7 : vector<32x1xf32> to vector<32x256xf32>
    %10 = vector.broadcast %8 : vector<1x256xf32> to vector<32x256xf32>
    %11 = arith.mulf %9, %10 : vector<32x256xf32>
    %12 = vector.extract_strided_slice %5 {offsets = [0, 1], sizes = [32, 1], strides = [1, 1]} : vector<32x4xf32> to vector<32x1xf32>
    %13 = vector.extract_strided_slice %4 {offsets = [1, 0], sizes = [1, 256], strides = [1, 1]} : vector<4x256xf32> to vector<1x256xf32>
    %14 = vector.broadcast %12 : vector<32x1xf32> to vector<32x256xf32>
    %15 = vector.broadcast %13 : vector<1x256xf32> to vector<32x256xf32>
    %16 = arith.mulf %14, %15 : vector<32x256xf32>
    %17 = arith.addf %11, %16 : vector<32x256xf32>
    %18 = vector.extract_strided_slice %5 {offsets = [0, 2], sizes = [32, 1], strides = [1, 1]} : vector<32x4xf32> to vector<32x1xf32>
    %19 = vector.extract_strided_slice %4 {offsets = [2, 0], sizes = [1, 256], strides = [1, 1]} : vector<4x256xf32> to vector<1x256xf32>
    %20 = vector.broadcast %18 : vector<32x1xf32> to vector<32x256xf32>
    %21 = vector.broadcast %19 : vector<1x256xf32> to vector<32x256xf32>
    %22 = arith.mulf %20, %21 : vector<32x256xf32>
    %23 = arith.addf %17, %22 : vector<32x256xf32>
    %24 = vector.extract_strided_slice %5 {offsets = [0, 3], sizes = [32, 1], strides = [1, 1]} : vector<32x4xf32> to vector<32x1xf32>
    %25 = vector.extract_strided_slice %4 {offsets = [3, 0], sizes = [1, 256], strides = [1, 1]} : vector<4x256xf32> to vector<1x256xf32>
    %26 = vector.broadcast %24 : vector<32x1xf32> to vector<32x256xf32>
    %27 = vector.broadcast %25 : vector<1x256xf32> to vector<32x256xf32>
    %28 = arith.mulf %26, %27 : vector<32x256xf32>
    %29 = arith.addf %23, %28 : vector<32x256xf32>
    %30 = vector.broadcast %6 : vector<32x1xf32> to vector<32x256xf32>
    %31 = arith.addf %29, %30 : vector<32x256xf32>
    %cst = arith.constant 0.000000e+00 : f32
    %32 = vector.broadcast %cst : f32 to vector<32x256xf32>
    %33 = arith.maximumf %31, %32 : vector<32x256xf32>
    %c0_7 = arith.constant 0 : index
    %c0_8 = arith.constant 0 : index
    %34 = vector.load %arg11[%c0_7, %c0_8] : memref<32x256xf32, #tpu.memory_space<vmem>>, vector<32x256xf32>
    %35 = arith.addf %34, %33 : vector<32x256xf32>
    %c0_9 = arith.constant 0 : index
    %c0_10 = arith.constant 0 : index
    %36 = vector.load %arg11[%c0_9, %c0_10] : memref<32x256xf32, #tpu.memory_space<vmem>>, vector<32x256xf32>
    tpu.vector_store %arg11[%c0_9, %c0_10], %35 {strides = array<i32>} : memref<32x256xf32, #tpu.memory_space<vmem>>, vector<32x256xf32>,
    %c0_i32_11 = arith.constant 0 : i32
    %37 = arith.cmpi eq, %arg1, %c0_i32_11 : i32
    %38 = arith.extui %37 : i1 to i32
    %c0_i32_12 = arith.constant 0 : i32
    %39 = arith.cmpi ne, %38, %c0_i32_12 : i32
    scf.if %39 {
      %c0_13 = arith.constant 0 : index
      %c0_14 = arith.constant 0 : index
      %40 = vector.load %arg11[%c0_13, %c0_14] : memref<32x256xf32, #tpu.memory_space<vmem>>, vector<32x256xf32>
      %cst_15 = arith.constant dense<0.000000e+00> : vector<32xf32>
      %41 = vector.multi_reduction <add>, %40, %cst_15 [1] : vector<32x256xf32> to vector<32xf32>
      %42 = vector.shape_cast %41 : vector<32xf32> to vector<32x1xf32>
      %cst_16 = arith.constant 3.906250e-03 : f32
      %43 = vector.broadcast %cst_16 : f32 to vector<32x1xf32>
      %44 = arith.mulf %42, %43 : vector<32x1xf32>
      %c0_17 = arith.constant 0 : index
      %c0_18 = arith.constant 0 : index
      %45 = vector.load %arg5[%c0_17, %c0_18] : memref<32x256xf32, #tpu.memory_space<vmem>>, vector<32x256xf32>
      %46 = vector.broadcast %44 : vector<32x1xf32> to vector<32x256xf32>
      %47 = arith.mulf %46, %45 : vector<32x256xf32>
      %cst_19 = arith.constant dense<0.000000e+00> : vector<256xf32>
      %48 = vector.multi_reduction <add>, %47, %cst_19 [0] : vector<32x256xf32> to vector<256xf32>
      %49 = vector.shape_cast %48 : vector<256xf32> to vector<1x256xf32>
      %c0_20 = arith.constant 0 : index
      %c0_21 = arith.constant 0 : index
      %50 = vector.load %arg6[%c0_20, %c0_21] : memref<1x256xf32, #tpu.memory_space<vmem>>, vector<1x256xf32>
      %51 = arith.addf %49, %50 : vector<1x256xf32>
      %52 = vector.extract_strided_slice %51 {offsets = [0, 0], sizes = [1, 128], strides = [1, 1]} : vector<1x256xf32> to vector<1x128xf32>
      %53 = vector.shape_cast %52 : vector<1x128xf32> to vector<1x1x128xf32>
      %c0_22 = arith.constant 0 : index
      %c0_23 = arith.constant 0 : index
      %c0_24 = arith.constant 0 : index
      %54 = vector.load %arg9[%c0_22, %c0_23, %c0_24] : memref<1x1x128xf32, #tpu.memory_space<vmem>>, vector<1x1x128xf32>
      tpu.vector_store %arg9[%c0_22, %c0_23, %c0_24], %53 {strides = array<i32>} : memref<1x1x128xf32, #tpu.memory_space<vmem>>, vector<1x1x128xf32>,
      %55 = vector.extract_strided_slice %51 {offsets = [0, 128], sizes = [1, 128], strides = [1, 1]} : vector<1x256xf32> to vector<1x128xf32>
      %cst_25 = arith.constant 0.000000e+00 : f32
      %56 = vector.broadcast %cst_25 : f32 to vector<1x128xf32>
      %57 = arith.maximumf %55, %56 : vector<1x128xf32>
      %c0_26 = arith.constant 0 : index
      %c0_27 = arith.constant 0 : index
      %58 = vector.load %arg7[%c0_26, %c0_27] : memref<1x128xf32, #tpu.memory_space<vmem>>, vector<1x128xf32>
      %59 = arith.mulf %57, %58 : vector<1x128xf32>
      %60 = tpu.iota {dimensions = array<i32: 1>} : vector<1x128xi32>
      %c0_28 = arith.constant 0 : index
      %c0_29 = arith.constant 0 : index
      %61 = vector.load %arg8[%c0_28, %c0_29] : memref<1x128xf32, #tpu.memory_space<vmem>>, vector<1x128xf32>
      %62 = vector.extract_strided_slice %59 {offsets = [0, 0], sizes = [1, 32], strides = [1, 1]} : vector<1x128xf32> to vector<1x32xf32>
      %cst_30 = arith.constant dense<0.000000e+00> : vector<1xf32>
      %63 = vector.multi_reduction <add>, %62, %cst_30 [1] : vector<1x32xf32> to vector<1xf32>
      %64 = vector.shape_cast %63 : vector<1xf32> to vector<1x1xf32>
      %c0_i32_31 = arith.constant 0 : i32
      %65 = vector.broadcast %c0_i32_31 : i32 to vector<1x128xi32>
      %66 = arith.cmpi eq, %60, %65 : vector<1x128xi32>
      %cst_32 = arith.constant 0.000000e+00 : f32
      %67 = vector.shape_cast %64 : vector<1x1xf32> to vector<1x1xf32>
      %68 = vector.broadcast %67 : vector<1x1xf32> to vector<1x128xf32>
      %69 = vector.broadcast %cst_32 : f32 to vector<1x128xf32>
      %70 = arith.select %66, %68, %69 : vector<1x128xi1>, vector<1x128xf32>
      %71 = arith.addf %61, %70 : vector<1x128xf32>
      %72 = vector.extract_strided_slice %59 {offsets = [0, 32], sizes = [1, 32], strides = [1, 1]} : vector<1x128xf32> to vector<1x32xf32>
      %cst_33 = arith.constant dense<0.000000e+00> : vector<1xf32>
      %73 = vector.multi_reduction <add>, %72, %cst_33 [1] : vector<1x32xf32> to vector<1xf32>
      %74 = vector.shape_cast %73 : vector<1xf32> to vector<1x1xf32>
      %c1_i32 = arith.constant 1 : i32
      %75 = vector.broadcast %c1_i32 : i32 to vector<1x128xi32>
      %76 = arith.cmpi eq, %60, %75 : vector<1x128xi32>
      %cst_34 = arith.constant 0.000000e+00 : f32
      %77 = vector.shape_cast %74 : vector<1x1xf32> to vector<1x1xf32>
      %78 = vector.broadcast %77 : vector<1x1xf32> to vector<1x128xf32>
      %79 = vector.broadcast %cst_34 : f32 to vector<1x128xf32>
      %80 = arith.select %76, %78, %79 : vector<1x128xi1>, vector<1x128xf32>
      %81 = arith.addf %71, %80 : vector<1x128xf32>
      %82 = vector.extract_strided_slice %59 {offsets = [0, 64], sizes = [1, 32], strides = [1, 1]} : vector<1x128xf32> to vector<1x32xf32>
      %cst_35 = arith.constant dense<0.000000e+00> : vector<1xf32>
      %83 = vector.multi_reduction <add>, %82, %cst_35 [1] : vector<1x32xf32> to vector<1xf32>
      %84 = vector.shape_cast %83 : vector<1xf32> to vector<1x1xf32>
      %c2_i32 = arith.constant 2 : i32
      %85 = vector.broadcast %c2_i32 : i32 to vector<1x128xi32>
      %86 = arith.cmpi eq, %60, %85 : vector<1x128xi32>
      %cst_36 = arith.constant 0.000000e+00 : f32
      %87 = vector.shape_cast %84 : vector<1x1xf32> to vector<1x1xf32>
      %88 = vector.broadcast %87 : vector<1x1xf32> to vector<1x128xf32>
      %89 = vector.broadcast %cst_36 : f32 to vector<1x128xf32>
      %90 = arith.select %86, %88, %89 : vector<1x128xi1>, vector<1x128xf32>
      %91 = arith.addf %81, %90 : vector<1x128xf32>
      %92 = vector.extract_strided_slice %59 {offsets = [0, 96], sizes = [1, 32], strides = [1, 1]} : vector<1x128xf32> to vector<1x32xf32>
      %cst_37 = arith.constant dense<0.000000e+00> : vector<1xf32>
      %93 = vector.multi_reduction <add>, %92, %cst_37 [1] : vector<1x32xf32> to vector<1xf32>
      %94 = vector.shape_cast %93 : vector<1xf32> to vector<1x1xf32>
      %c3_i32 = arith.constant 3 : i32
      %95 = vector.broadcast %c3_i32 : i32 to vector<1x128xi32>
      %96 = arith.cmpi eq, %60, %95 : vector<1x128xi32>
      %cst_38 = arith.constant 0.000000e+00 : f32
      %97 = vector.shape_cast %94 : vector<1x1xf32> to vector<1x1xf32>
      %98 = vector.broadcast %97 : vector<1x1xf32> to vector<1x128xf32>
      %99 = vector.broadcast %cst_38 : f32 to vector<1x128xf32>
      %100 = arith.select %96, %98, %99 : vector<1x128xi1>, vector<1x128xf32>
      %101 = arith.addf %91, %100 : vector<1x128xf32>
      %102 = vector.shape_cast %101 : vector<1x128xf32> to vector<1x1x128xf32>
      %c0_39 = arith.constant 0 : index
      %c0_40 = arith.constant 0 : index
      %c0_41 = arith.constant 0 : index
      %103 = vector.load %arg10[%c0_39, %c0_40, %c0_41] : memref<1x1x128xf32, #tpu.memory_space<vmem>>, vector<1x1x128xf32>
      tpu.vector_store %arg10[%c0_39, %c0_40, %c0_41], %102 {strides = array<i32>} : memref<1x1x128xf32, #tpu.memory_space<vmem>>, vector<1x1x128xf32>,
    } else {
    }
    return
  }
  func.func @transform_0(%arg0: i32, %arg1: i32) -> (i32, i32, i32) {
    %c0_i32 = arith.constant 0 : i32
    %c0_i32_0 = arith.constant 0 : i32
    return %arg0, %c0_i32, %arg1 : i32, i32, i32
  }
  func.func @transform_1(%arg0: i32, %arg1: i32) -> (i32, i32) {
    %c0_i32 = arith.constant 0 : i32
    %c0_i32_0 = arith.constant 0 : i32
    %c0_i32_1 = arith.constant 0 : i32
    return %c0_i32, %c0_i32_0 : i32, i32
  }
  func.func @transform_2(%arg0: i32, %arg1: i32) -> (i32, i32) {
    %c0_i32 = arith.constant 0 : i32
    %c0_i32_0 = arith.constant 0 : i32
    %c0_i32_1 = arith.constant 0 : i32
    return %c0_i32, %c0_i32_0 : i32, i32
  }
  func.func @transform_3(%arg0: i32, %arg1: i32) -> (i32, i32) {
    %c0_i32 = arith.constant 0 : i32
    %c0_i32_0 = arith.constant 0 : i32
    %c0_i32_1 = arith.constant 0 : i32
    return %c0_i32, %c0_i32_0 : i32, i32
  }
  func.func @transform_4(%arg0: i32, %arg1: i32) -> (i32, i32) {
    %c0_i32 = arith.constant 0 : i32
    %c0_i32_0 = arith.constant 0 : i32
    %c0_i32_1 = arith.constant 0 : i32
    return %c0_i32, %c0_i32_0 : i32, i32
  }
  func.func @transform_5(%arg0: i32, %arg1: i32) -> (i32, i32) {
    %c0_i32 = arith.constant 0 : i32
    %c0_i32_0 = arith.constant 0 : i32
    %c0_i32_1 = arith.constant 0 : i32
    return %c0_i32, %c0_i32_0 : i32, i32
  }
  func.func @transform_6(%arg0: i32, %arg1: i32) -> (i32, i32) {
    %c0_i32 = arith.constant 0 : i32
    %c0_i32_0 = arith.constant 0 : i32
    %c0_i32_1 = arith.constant 0 : i32
    return %c0_i32, %c0_i32_0 : i32, i32
  }
  func.func @transform_7(%arg0: i32, %arg1: i32) -> (i32, i32, i32) {
    %c0_i32 = arith.constant 0 : i32
    %c0_i32_0 = arith.constant 0 : i32
    %c0_i32_1 = arith.constant 0 : i32
    return %arg0, %c0_i32, %c0_i32_0 : i32, i32, i32
  }
  func.func @transform_8(%arg0: i32, %arg1: i32) -> (i32, i32, i32) {
    %c0_i32 = arith.constant 0 : i32
    %c0_i32_0 = arith.constant 0 : i32
    %c0_i32_1 = arith.constant 0 : i32
    return %arg0, %c0_i32, %c0_i32_0 : i32, i32, i32
  }
}

</mosaic_0001>

<bundles_post_ra>
// kernel: tpu_custom_call.1
= control target key start
LH: loop header
LB: loop body
LE: loop exit
PB: predicated region body
PF: predicated region fallthrough
CT: control target
= control target key end

     0   :  { %s1421_s0 = inlined_call_operand.hbm [shape: f32[2,4,256], index: 0, kind: input, shape index: {}]   ;;  %s1422_s1 = inlined_call_operand.vmem [shape: f32[32,4], index: 1, kind: input, shape index: {}]   ;;  %s1423_s2 = inlined_call_operand.vmem [shape: f32[32,1], index: 2, kind: input, shape index: {}]   ;;  %s1424_s3 = inlined_call_operand.vmem [shape: f32[32,256], index: 3, kind: input, shape index: {}]   ;;  %s1425_s4 = inlined_call_operand.vmem [shape: f32[1,256], index: 4, kind: input, shape index: {}]   ;;  %s1426_s5 = inlined_call_operand.vmem [shape: f32[1,128], index: 5, kind: input, shape index: {}]   ;;  %s1427_s6 = inlined_call_operand.vmem [shape: f32[1,128], index: 6, kind: input, shape index: {}]   ;;  %s1428_s7 = inlined_call_operand.hbm [shape: f32[2,1,128], index: 7, kind: output, shape index: {0}]   ;;  %s1429_s8 = inlined_call_operand.hbm [shape: f32[2,1,128], index: 8, kind: output, shape index: {1}]  }
   0x1   :  { %1432 = sst [smem:[#allocation13_spill]] %s1421_s0 }
   0x2   :  { %14 = vsyncpa [#allocation4], 0 }
   0x3   :  { %16 = vsyncpa [#allocation4 + $0x1], 0 }
   0x4   :  { %17 = vsyncpa [#allocation5], 0 }
   0x5   :  { %19 = vsyncpa [#allocation5 + $0x1], 0 }
   0x6   :  { %20 = vsyncpa [#allocation8], 0 }
   0x7   :  { %22 = vsyncpa [#allocation8 + $0x1], 0  ;;  %s1175_s27 = smov 0   ;;  %s1177_s28 = smov 0  }
   0x8   :  { %s1179_s29 = smov 0   ;;  %s1181_s30 = smov 0  }
   0x9   :  { %s1183_s9 = smov 0   ;;  %s1185_s10 = smov 0  }
   0xa LB: > { %s879_s11 = sadd.s32 4294967295, %s1118_s10   ;;  %s880_s12 = sadd.s32 4294967294, %s1118_s10   ;;  %s1118_s10 = sphi %s1185_s10, %s28_s10   ;;  %s1114_s9 = sphi %s1183_s9, %s1448_s9   ;;  %s1110_s30 = sphi %s1181_s30, %s1447_s30   ;;  %s1106_s29 = sphi %s1179_s29, %s1446_s29   ;;  %s1102_s28 = sphi %s1177_s28, %s1445_s28   ;;  %s1098_s27 = sphi %s1175_s27, %s1444_s27  }
   0xb   : > { %s40_s13 = sadd.s32 1, %s1114_s9  ;;  %s49_s14 = sadd.s32 1, %s1106_s29 }
   0xc   : > { %p42_p0 = scmp.ge.s32.totalorder %s40_s13, 2  ;;  %p56_p1 = scmp.ne.s32.totalorder %s1106_s29, %s1102_s28 }
   0xd   : > { %p57_p2 = scmp.eq.s32.totalorder %s1118_s10, 0  ;;  %p62_p3 = scmp.ne.s32.totalorder %s1102_s28, %s1098_s27 }
   0xe   : > { %s1450_s13 = smov (%p42_p0, %s40_s13), 0  ;;  %p63_p5 = scmp.eq.s32.totalorder %s879_s11, 0 }
   0xf   : > { %1433 = sst [smem:[#allocation12_spill]] %s1450_s13  ;;  %p1216_p4 = por %p57_p2, %p56_p1 }
  0x10   : > { %s44_s16 = ssub.s32 %s1114_s9, %s1450_s13  ;;  %p212_p6 = scmp.eq.s32.totalorder %s879_s11, 1 }
  0x11   : > { %p47_p7 = scmp.eq.s32.totalorder %s44_s16, 0  ;;  %p1222_p8 = por %p63_p5, %p62_p3 }
  0x12   : > { %p1226_p9 = por %p212_p6, %p56_p1  ;;  %p218_p10 = scmp.eq.s32.totalorder %s880_s12, 1 }
  0x13   : > { %s1231_s19 = scalar_select %p47_p7, %s1106_s29, %s49_s14  }
  0x14   : > { %p1233_p11 = por %p218_p10, %p62_p3  ;;  %p910_p13 = scmp.lt.s32.totalorder %s1118_s10, 2 }
  0x15   : > { %s282_s21 = sand.u32 1, %s1106_s29   ;;  %s892_s23 = sshll.u32 %s1114_s9, 7 }
  0x16   : > { %s1437_s20 = scalar_select %p1233_p11, 1, 0 }
  0x17   : > { %s883_s22 = sshll.u32 %s282_s21, 3  ;;  %s1438_s0 = sld [smem:[#allocation13_spill]] }
  0x18   : > { %s286_s11 = scalar_lea.vmem [#allocation3], %s883_s22  ;;  %p1246_p0 = pnand %p910_p13, %p1216_p4 }
  0x19   : > { %s296_s16 = sshll.u32 %s286_s11, 4  ;;  %p886_p1 = scmp.ge.s32.totalorder %s1118_s10, 1  ;;  %s297_s16 = int_to_ptr.vmem [resolvable:$true] %s296_s16 }
  0x1a   : > { %p301_p2 = scmp.lt.s32.totalorder %s1118_s10, 3  ;;  %s283_s14 = scalar_lea.sflag [#allocation4], %s282_s21 }
  0x1b   : > { %p982_p3 = pneg %p1246_p0  ;;  %s993_s13 = scalar_lea.vmem %s297_s16, 128 }
  0x1c   : > { %p994_p5 = scmp.ne.s32.totalorder %s297_s16, %s993_s13  ;;  %s1120_s24 = smov [#allocation3]  }
  0x1d   : > { %s294_s26 = scalar_lea.hbm %s1438_s0, %s892_s23  ;;  %s998_s23 = sshll.u32 %s1120_s24, 4  ;;  %s999_s23 = int_to_ptr.vmem [resolvable:$false] %s998_s23 }
  0x1e   : > { %p996_p6 = pnand %p994_p5, %p982_p3  ;;  %s1000_s22 = scalar_lea.vmem %s999_s23, 256 }
  0x1f   : > { %p1001_p10 = scmp.lt.s32.totalorder %s297_s16, %s999_s23  ;;  %p1002_p12 = scmp.lt.s32.totalorder %s1000_s22, %s993_s13 }
  0x20   : > { %p997_p7 = pneg %p996_p6 }
  0x21   : > { %p1003_p4 = por %p1002_p12, %p1001_p10 }
  0x23   : > { %p1004_p13 = pnand %p1003_p4, %p997_p7 }
  0x25   : > { %1007 = shalt.err (!%p1004_p13)
}
  0x26   : > { %902 = dma.hbm_to_vmem [thread:$0]  (!%p1246_p0), %s294_s26, 128, %s297_s16, %s283_s14  }
  0x27   : > { %p302_p11 = pnand %p886_p1, %p301_p2 }
  0x28   : > { %s1261_s15 = sand.u32 (!%p302_p11), 1, %s1102_s28  }
  0x29   : > { %305 = sbr.rel (%p302_p11) target bundleno = 668 (0x29c), region = 48  ;;  %s887_s21 = sshll.u32 (!%p302_p11), %s1261_s15, 3 }
  0x2a   : > { %s308_s13 = scalar_lea.sflag (!%p302_p11), [#allocation4], %s1261_s15  ;;  %s1265_s25 = scalar_lea.vmem (!%p302_p11), [#allocation3], %s887_s21 }
  0x2e   : > { %1085 = dma.done.wait (%p1222_p8), %s308_s13, 128  }
  0x2f   : > { %1087 = vsyncadd (%p1222_p8), %s308_s13, 4294967168  ;;  %v1121_v0 = vmov 1   ;;  %v1122_v1 = vmov 0   ;;  %v361_v2 = vld [vmem:[%s1422_s1] sm:$0xff]  ;;  %v362_v3 = vld [vmem:[%s1422_s1 + $0x8] sm:$0xff]  ;;  %v1123_v5 = vmov 2   ;;  %v390_v14 = vlaneseq }
  0x30   : > { %968 = vset.pattern.permute.xlu1 %v1121_v0  ;;  %967 = vset.pattern.permute.xlu0 %v1122_v1  ;;  %v363_v4 = vld [vmem:[%s1422_s1 + $0x10] sm:$0xff]  ;;  %v364_v6 = vld [vmem:[%s1422_s1 + $0x18] sm:$0xff]  ;;  %v1124_v7 = vmov 3   ;;  %v366_v8 = vld [vmem:[%s1423_s2 + $0x8] sm:$0xff]  ;;  %s340_s11 = scalar_lea.vmem [#allocation6], %s1261_s15  ;;  %s1125_s16 = smov 64  }
  0x31   : > { %417 = vperm.xlu1 %968, %v361_v2   ;;  %371 = vperm.xlu0 %967, %v361_v2   ;;  %v365_v9 = vld [vmem:[%s1423_s2] sm:$0xff]  ;;  %v367_v10 = vld [vmem:[%s1423_s2 + $0x10] sm:$0xff]  ;;  %v368_v11 = vld [vmem:[%s1423_s2 + $0x18] sm:$0xff]  ;;  %v391_v17 = vshrl.u32 %v390_v14, 7  ;;  %s1126_s12 = smov 96   ;;  %s1127_s14 = smov 32  }
  0x32   : > { %v360_v22 = vld [vmem:[%s1265_s25] sm:$0xff]  ;;  %vm708_vm0 = vcmask 253952   ;;  %s1431_s25 = sshll.u32 %s1110_s30, 4  ;;  %s761_s22 = sshll.u32 %s340_s11, 4  ;;  %s762_s22 = int_to_ptr.vmem [resolvable:$true] %s761_s22 }
  0x33   : > { %v1298_v20 = vsub.s32 1, %v391_v17  ;;  %v438_v21 = vsub.s32 5, %v391_v17  ;;  %v1301_v23 = vsub.s32 0, %v391_v17  ;;  %v396_v24 = vsub.s32 4, %v391_v17  ;;  %s759_s23 = scalar_lea.hbm %s1428_s7, %s1431_s25  ;;  %s745_s21 = scalar_lea.sflag [#allocation5], %s1261_s15 }
  0x34   : > { %v484_v25 = vsub.s32 2, %v391_v17  ;;  %v488_v26 = vsub.s32 6, %v391_v17  ;;  %v534_v29 = vsub.s32 3, %v391_v17  ;;  %v538_v30 = vsub.s32 7, %v391_v17  ;;  %s1008_s13 = scalar_lea.vmem %s762_s22, 16  ;;  %s1128_s26 = smov [#allocation6]  }
  0x35   : > { %421 = vperm.xlu1 %968, %v362_v3   ;;  %376 = vperm.xlu0 %967, %v362_v3   ;;  %v435_v31 = vrot.slane %v360_v22, %v1298_v20  ;;  %v439_v32 = vrot.slane %v360_v22, %v438_v21  ;;  %v393_v33 = vrot.slane %v360_v22, %v1301_v23  ;;  %p1009_p8 = scmp.ne.s32.totalorder %s762_s22, %s1008_s13 }
  0x36   : > { %v397_v34 = vrot.slane %v360_v22, %v396_v24  ;;  %v485_v35 = vrot.slane %v360_v22, %v484_v25  ;;  %v489_v36 = vrot.slane %v360_v22, %v488_v26  ;;  %v535_v39 = vrot.slane %v360_v22, %v534_v29 }
  0x37   : > { %v539_v40 = vrot.slane %v360_v22, %v538_v30  ;;  %v445_v41 = vrot.slane %v435_v31, %v1298_v20  ;;  %v449_v42 = vrot.slane %v439_v32, %v1298_v20  ;;  %v403_v43 = vrot.slane %v393_v33, %v1301_v23  ;;  %p1010_p11 = pnand %p1009_p8, %p1226_p9 }
  0x38   : > { %v407_v44 = vrot.slane %v397_v34, %v1301_v23  ;;  %v495_v45 = vrot.slane %v485_v35, %v484_v25  ;;  %v499_v46 = vrot.slane %v489_v36, %v484_v25  ;;  %v1309_v47 = vrot.slane %v535_v39, %v534_v29 }
  0x39   : > { %425 = vperm.xlu1 %968, %v363_v4   ;;  %381 = vperm.xlu0 %967, %v363_v4   ;;  %v1311_v48 = vrot.slane %v539_v40, %v534_v29  ;;  %p1011_p12 = pneg %p1010_p11 }
  0x3d   : > { %970 = vset.pattern.permute.xlu1 %v1123_v5  ;;  %969 = vset.pattern.permute.xlu0 %v1123_v5 }
  0x3e   : > { %471 = vperm.xlu1 %970, %v362_v3   ;;  %467 = vperm.xlu0 %969, %v361_v2  }
  0x42   : > { %971 = vset.pattern.permute.xlu1 %v1122_v1  ;;  %972 = vset.pattern.permute.xlu0 %v1121_v0 }
  0x43   : > { %386 = vperm.xlu1 %971, %v364_v6   ;;  %429 = vperm.xlu0 %972, %v364_v6  }
  0x47   : > { %973 = vset.pattern.permute.xlu1 %v1123_v5  ;;  %975 = vset.pattern.permute.xlu0 %v1124_v7 }
  0x48   : > { %475 = vperm.xlu1 %973, %v363_v4   ;;  %521 = vperm.xlu0 %975, %v362_v3  }
  0x4c   : > { %974 = vset.pattern.permute.xlu1 %v1124_v7  ;;  %529 = vperm.xlu0 %975, %v364_v6  }
  0x4d   : > { %517 = vperm.xlu1 %974, %v361_v2  }
  0x50   : > { %979 = vset.pattern.permute.xlu0 %v1122_v1 }
  0x51   : > { %976 = vset.pattern.permute.xlu1 %v1123_v5  ;;  %573 = vperm.xlu0 %979, %v366_v8  }
  0x52   : > { %479 = vperm.xlu1 %976, %v364_v6  }
  0x56   : > { %977 = vset.pattern.permute.xlu1 %v1124_v7 }
  0x57   : > { %525 = vperm.xlu1 %977, %v363_v4  }
  0x5b   : > { %978 = vset.pattern.permute.xlu1 %v1122_v1 }
  0x5c   : > { %568 = vperm.xlu1 %978, %v365_v9  }
  0x60   : > { %578 = vperm.xlu1 %978, %v367_v10  }
  0x64   : > { %583 = vperm.xlu1 %978, %v368_v11  }
  0xac   : > { %v418_v12 = vpop.permute.xlu1 %417  ;;  %v372_v13 = vpop.permute.xlu0 %371 }
  0xad   : > { %v450_v7 = vmul.f32 %v445_v41, %v418_v12  ;;  %v451_v8 = vmul.f32 %v449_v42, %v418_v12  ;;  %v408_v9 = vmul.f32 %v403_v43, %v372_v13  ;;  %v409_v10 = vmul.f32 %v407_v44, %v372_v13 }
  0xaf   : > { %v459_v29 = vadd.f32 %v451_v8, %v409_v10 }
  0xb0   : > { %v422_v15 = vpop.permute.xlu1 %421  ;;  %v377_v16 = vpop.permute.xlu0 %376 }
  0xb1   : > { %v452_v49 = vmul.f32 %v445_v41, %v422_v15  ;;  %v453_v50 = vmul.f32 %v449_v42, %v422_v15  ;;  %v410_v51 = vmul.f32 %v403_v43, %v377_v16  ;;  %v411_v52 = vmul.f32 %v407_v44, %v377_v16 }
  0xb3   : > { %v460_v57 = vadd.f32 %v452_v49, %v410_v51  ;;  %v461_v58 = vadd.f32 %v453_v50, %v411_v52 }
  0xb4   : > { %v426_v18 = vpop.permute.xlu1 %425  ;;  %v1296_v19 = vpop.permute.xlu0 %381 }
  0xb5   : > { %v454_v16 = vmul.f32 %v445_v41, %v426_v18  ;;  %v455_v22 = vmul.f32 %v449_v42, %v426_v18  ;;  %v412_v24 = vmul.f32 %v403_v43, %v1296_v19  ;;  %v413_v25 = vmul.f32 %v407_v44, %v1296_v19 }
  0xb7   : > { %v462_v39 = vadd.f32 %v454_v16, %v412_v24  ;;  %v463_v40 = vadd.f32 %v455_v22, %v413_v25  ;;  %v653_v16 = vld [vmem:[%s1424_s3] sm:$0xff]  ;;  %v656_v24 = vld [vmem:[%s1424_s3 + $0x18] sm:$0xff] }
  0xb8   : > { %v657_v25 = vld [vmem:[%s1424_s3 + $0x20] sm:$0xff] }
  0xb9   : > { %v472_v27 = vpop.permute.xlu1 %471  ;;  %v468_v28 = vpop.permute.xlu0 %467 }
  0xba   : > { %v502_v55 = vmul.f32 %v495_v45, %v472_v27  ;;  %v503_v56 = vmul.f32 %v499_v46, %v472_v27  ;;  %v500_v17 = vmul.f32 %v495_v45, %v468_v28  ;;  %v501_v21 = vmul.f32 %v499_v46, %v468_v28 }
  0xbb   : > { %v458_v27 = vadd.f32 %v450_v7, %v408_v9 }
  0xbc   : > { %v510_v63 = vadd.f32 %v502_v55, %v460_v57  ;;  %v511_v0 = vadd.f32 %v503_v56, %v461_v58  ;;  %v509_v28 = vadd.f32 %v501_v21, %v459_v29  ;;  %v655_v21 = vld [vmem:[%s1424_s3 + $0x10] sm:$0xff] }
  0xbd   : > { %v508_v35 = vadd.f32 %v500_v17, %v458_v27  ;;  %v654_v17 = vld [vmem:[%s1424_s3 + $0x8] sm:$0xff] }
  0xbe   : > { %v387_v37 = vpop.permute.xlu1 %386  ;;  %v430_v38 = vpop.permute.xlu0 %429 }
  0xbf   : > { %v414_v32 = vmul.f32 %v403_v43, %v387_v37  ;;  %v415_v13 = vmul.f32 %v407_v44, %v387_v37  ;;  %v456_v33 = vmul.f32 %v445_v41, %v430_v38  ;;  %v457_v34 = vmul.f32 %v449_v42, %v430_v38 }
  0xc1   : > { %v464_v55 = vadd.f32 %v456_v33, %v414_v32  ;;  %v465_v43 = vadd.f32 %v457_v34, %v415_v13  ;;  %v659_v34 = vld [vmem:[%s1424_s3 + $0x30] sm:$0xff] }
  0xc3   : > { %v476_v53 = vpop.permute.xlu1 %475  ;;  %v522_v54 = vpop.permute.xlu0 %521 }
  0xc4   : > { %v552_v59 = vmul.f32 %v1309_v47, %v522_v54  ;;  %v553_v60 = vmul.f32 %v1311_v48, %v522_v54  ;;  %v504_v18 = vmul.f32 %v495_v45, %v476_v53  ;;  %v505_v36 = vmul.f32 %v499_v46, %v476_v53 }
  0xc6   : > { %v560_v1 = vadd.f32 %v552_v59, %v510_v63  ;;  %v561_v2 = vadd.f32 %v553_v60, %v511_v0  ;;  %v512_v41 = vadd.f32 %v504_v18, %v462_v39  ;;  %v513_v38 = vadd.f32 %v505_v36, %v463_v40 }
  0xc7   : > { %v530_v61 = vpop.permute.xlu0 %529 }
  0xc8   : > { %v518_v62 = vpop.permute.xlu1 %517  ;;  %v556_v56 = vmul.f32 %v1309_v47, %v530_v61  ;;  %v557_v53 = vmul.f32 %v1311_v48, %v530_v61 }
  0xc9   : > { %v550_v30 = vmul.f32 %v1309_v47, %v518_v62  ;;  %v551_v31 = vmul.f32 %v1311_v48, %v518_v62 }
  0xcb   : > { %v558_v52 = vadd.f32 %v550_v30, %v508_v35  ;;  %v559_v54 = vadd.f32 %v551_v31, %v509_v28  ;;  %v660_v35 = vld [vmem:[%s1424_s3 + $0x38] sm:$0xff] }
  0xcc   : > { %v574_v3 = vpop.permute.xlu0 %573 }
  0xcd   : > { %v588_v4 = vadd.f32 %v574_v3, %v560_v1  ;;  %v589_v5 = vadd.f32 %v574_v3, %v561_v2  ;;  %v480_v6 = vpop.permute.xlu1 %479 }
  0xce   : > { %v506_v19 = vmul.f32 %v495_v45, %v480_v6  ;;  %v507_v49 = vmul.f32 %v499_v46, %v480_v6 }
  0xcf   : > { %v596_v11 = vmax.f32 %v588_v4, 0.0  ;;  %v597_v15 = vmax.f32 %v589_v5, 0.0 }
  0xd0   : > { %v514_v57 = vadd.f32 %v506_v19, %v464_v55  ;;  %v515_v45 = vadd.f32 %v507_v49, %v465_v43 }
  0xd1   : > { %v640_v26 = vadd.f32 %v597_v15, %v596_v11 }
  0xd2   : > { %v526_v12 = vpop.permute.xlu1 %525  ;;  %v564_v4 = vadd.f32 %v556_v56, %v514_v57  ;;  %v565_v5 = vadd.f32 %v557_v53, %v515_v45 }
  0xd3   : > { %641 = vadd.xlane.f32.xlu1 %v640_v26  ;;  %v554_v50 = vmul.f32 %v1309_v47, %v526_v12  ;;  %v555_v51 = vmul.f32 %v1311_v48, %v526_v12  ;;  %v658_v26 = vld [vmem:[%s1424_s3 + $0x28] sm:$0xff] }
  0xd5   : > { %v562_v59 = vadd.f32 %v554_v50, %v512_v41  ;;  %v563_v60 = vadd.f32 %v555_v51, %v513_v38 }
  0xd7   : > { %v569_v37 = vpop.permute.xlu1 %568 }
  0xd8   : > { %v586_v42 = vadd.f32 %v569_v37, %v558_v52  ;;  %v587_v44 = vadd.f32 %v569_v37, %v559_v54 }
  0xda   : > { %v594_v46 = vmax.f32 %v586_v42, 0.0  ;;  %v595_v58 = vmax.f32 %v587_v44, 0.0  ;;  %v687_v42 = vld [vmem:[%s1425_s4] sm:$0x3] }
  0xdb   : > { %v579_v62 = vpop.permute.xlu1 %578  ;;  %v696_v45 = vrot.slane %v687_v42, %v1298_v20 }
  0xdc   : > { %v590_v63 = vadd.f32 %v579_v62, %v562_v59  ;;  %v591_v0 = vadd.f32 %v579_v62, %v563_v60  ;;  %v637_v1 = vadd.f32 %v595_v58, %v594_v46  ;;  %v692_v46 = vrot.slane %v687_v42, %v1301_v23 }
  0xde   : > { %v598_v2 = vmax.f32 %v590_v63, 0.0  ;;  %v599_v3 = vmax.f32 %v591_v0, 0.0  ;;  %638 = vadd.xlane.f32.xlu0 %v637_v1  ;;  %v703_v63 = vld [vmem:[%s1426_s5] sm:$0x1] }
  0xdf   : > { %v584_v6 = vpop.permute.xlu1 %583 }
  0xe0   : > { %v592_v7 = vadd.f32 %v584_v6, %v564_v4  ;;  %v593_v47 = vadd.f32 %v584_v6, %v565_v5  ;;  %v643_v8 = vadd.f32 %v599_v3, %v598_v2 }
  0xe2   : > { %v600_v48 = vmax.f32 %v592_v7, 0.0  ;;  %v601_v61 = vmax.f32 %v593_v47, 0.0  ;;  %644 = vadd.xlane.f32.xlu0 %v643_v8 }
  0xe4   : > { %v646_v9 = vadd.f32 %v601_v61, %v600_v48 }
  0xe6   : > { %647 = vadd.xlane.f32.xlu0 %v646_v9 }
 0x15c   : > { %v642_v10 = vpop.xlane.xlu1 %641 }
 0x15d   : > { %v650_v22 = vmul.f32 0.00390625, %v642_v10 }
 0x15f   : > { %v663_v12 = vmul.f32 %v655_v21, %v650_v22  ;;  %v664_v32 = vmul.f32 %v656_v24, %v650_v22 }
 0x167   : > { %v639_v11 = vpop.xlane.xlu0 %638 }
 0x168   : > { %v649_v15 = vmul.f32 0.00390625, %v639_v11 }
 0x16a   : > { %v661_v29 = vmul.f32 %v653_v16, %v649_v15  ;;  %v662_v30 = vmul.f32 %v654_v17, %v649_v15 }
 0x16b   : > { %v645_v27 = vpop.xlane.xlu0 %644 }
 0x16c   : > { %v651_v31 = vmul.f32 0.00390625, %v645_v27  ;;  %v669_v18 = vadd.f32 %v663_v12, %v661_v29  ;;  %v678_v36 = vadd.f32 %v664_v32, %v662_v30 }
 0x16e   : > { %v665_v13 = vmul.f32 %v657_v25, %v651_v31  ;;  %v666_v33 = vmul.f32 %v658_v26, %v651_v31 }
 0x16f   : > { %v648_v28 = vpop.xlane.xlu0 %647 }
 0x170   : > { %v652_v39 = vmul.f32 0.00390625, %v648_v28  ;;  %v670_v40 = vadd.f32 %v669_v18, %v665_v13  ;;  %v679_v19 = vadd.f32 %v678_v36, %v666_v33 }
 0x172   : > { %v667_v49 = vmul.f32 %v659_v34, %v652_v39  ;;  %v668_v50 = vmul.f32 %v660_v35, %v652_v39 }
 0x174   : > { %v671_v51 = vadd.f32 %v670_v40, %v667_v49  ;;  %v680_v52 = vadd.f32 %v679_v19, %v668_v50 }
 0x176   : > { %v672_v54 = vrot.slane %v671_v51, 4  ;;  %v681_v55 = vrot.slane %v680_v52, 4 }
 0x178   : > { %v673_v43 = vadd.f32 %v672_v54, %v671_v51  ;;  %v682_v37 = vadd.f32 %v681_v55, %v680_v52 }
 0x17a   : > { %v674_v41 = vrot.slane %v673_v43, 2  ;;  %v683_v38 = vrot.slane %v682_v37, 2 }
 0x17c   : > { %v675_v44 = vadd.f32 %v674_v41, %v673_v43  ;;  %v684_v56 = vadd.f32 %v683_v38, %v682_v37 }
 0x17e   : > { %v676_v53 = vrot.slane %v675_v44, 1  ;;  %v685_v57 = vrot.slane %v684_v56, 1 }
 0x180   : > { %v677_v58 = vadd.f32 %v676_v53, %v675_v44  ;;  %v686_v59 = vadd.f32 %v685_v57, %v684_v56 }
 0x182   : > { %v700_v60 = vadd.f32 %v696_v45, %v686_v59  ;;  %v699_v62 = vadd.f32 %v692_v46, %v677_v58 }
 0x184   : > { %v702_v0 = vmax.f32 %v700_v60, 0.0  ;;  %701 = vst [vmem:[%s340_s11] sm:$0x1] %v699_v62 }
 0x186   : > { %v704_v1 = vmul.f32 %v703_v63, %v702_v0 }
 0x188   : > { %725 = vrot.lane.b32.xlu0 %v704_v1, %s1125_s16  ;;  %716 = vrot.lane.b32.xlu1 %v704_v1, %s1126_s12  ;;  %v709_v20 = vsel %vm708_vm0, %v704_v1, 0.0  ;;  %s1012_s16 = sshll.u32 %s1128_s26, 4  ;;  %s1013_s16 = int_to_ptr.vmem [resolvable:$false] %s1012_s16 }
 0x189   : > { %s1014_s12 = scalar_lea.vmem %s1013_s16, 32  ;;  %p1015_p0 = scmp.lt.s32.totalorder %s762_s22, %s1013_s16 }
 0x18a   : > { %p1016_p1 = scmp.lt.s32.totalorder %s1014_s12, %s1008_s13 }
 0x18c   : > { %734 = vrot.lane.b32.xlu1 %v704_v1, %s1127_s14  ;;  %p1017_p2 = por %p1016_p1, %p1015_p0 }
 0x18e   : > { %p1018_p3 = pnand %p1017_p2, %p1011_p12 }
 0x1b0   : > { %710 = vadd.xlane.f32.xlu1 %v709_v20 }
 0x1fa   : > { %v717_v23 = vpop.permute.xlu1 %716  ;;  %v726_v3 = vpop.permute.xlu0 %725 }
 0x1fb   : > { %v719_v2 = vsel %vm708_vm0, %v717_v23, 0.0  ;;  %v728_v5 = vsel %vm708_vm0, %v726_v3, 0.0 }
 0x1fc   : > { %720 = vadd.xlane.f32.xlu0 %v719_v2 }
 0x1fe   : > { %v735_v4 = vpop.permute.xlu1 %734 }
 0x1ff   : > { %v737_v6 = vsel %vm708_vm0, %v735_v4, 0.0 }
 0x200   : > { %729 = vadd.xlane.f32.xlu0 %v728_v5  ;;  %738 = vadd.xlane.f32.xlu1 %v737_v6 }
 0x201   : > { %1021 = shalt.err (!%p1018_p3)
}
 0x202   : > { %s1022_s14 = scalar_lea.hbm %s759_s23, 16  ;;  %s1026_s17 = scalar_lea.hbm %s1428_s7, 32 }
 0x203   : > { %p1023_p5 = scmp.ne.s32.totalorder %s759_s23, %s1022_s14  ;;  %p1027_p10 = scmp.lt.s32.totalorder %s759_s23, %s1428_s7 }
 0x204   : > { %p1028_p4 = scmp.lt.s32.totalorder %s1026_s17, %s1022_s14 }
 0x205   : > { %p1024_p6 = pnand %p1023_p5, %p1226_p9 }
 0x206   : > { %p1029_p13 = por %p1028_p4, %p1027_p10 }
 0x207   : > { %p1025_p7 = pneg %p1024_p6 }
 0x209   : > { %p1030_p8 = pnand %p1029_p13, %p1025_p7 }
 0x20b   : > { %1033 = shalt.err (!%p1030_p8)
}
 0x20c   : > { %895 = dma.vmem_to_hbm [thread:$0]  (%p1226_p9), %s762_s22, 16, %s759_s23, %s745_s21   ;;  %v706_v7 = vand.u32 127, %v390_v14  ;;  %v707_v8 = vld [vmem:[%s1427_s6] sm:$0x1] }
 0x20d   : > { %s346_s0 = scalar_lea.vmem [#allocation7], %s1261_s15  ;;  %s1440_s23 = sshll.u32 %s1110_s30, 4 }
 0x20e   : > { %vm712_vm1 = vcmp.eq.s32.totalorder %v706_v7, 0  ;;  %vm722_vm2 = vcmp.eq.s32.totalorder %v706_v7, 1  ;;  %vm731_vm3 = vcmp.eq.s32.totalorder %v706_v7, 2  ;;  %vm740_vm4 = vcmp.eq.s32.totalorder %v706_v7, 3  ;;  %s774_s25 = sshll.u32 %s346_s0, 4  ;;  %s772_s16 = scalar_lea.hbm %s1429_s8, %s1440_s23  ;;  %s775_s25 = int_to_ptr.vmem [resolvable:$true] %s774_s25 }
 0x20f   : > { %s749_s12 = scalar_lea.sflag [#allocation8], %s1261_s15  ;;  %s1034_s14 = scalar_lea.vmem %s775_s25, 16 }
 0x210   : > { %p1035_p11 = scmp.ne.s32.totalorder %s775_s25, %s1034_s14  ;;  %s1129_s11 = smov [#allocation7]  }
 0x211   : > { %s1038_s24 = sshll.u32 %s1129_s11, 4  ;;  %s1039_s24 = int_to_ptr.vmem [resolvable:$false] %s1038_s24 }
 0x212   : > { %p1036_p12 = pnand %p1035_p11, %p1226_p9  ;;  %s1040_s17 = scalar_lea.vmem %s1039_s24, 32 }
 0x213   : > { %p1041_p1 = scmp.lt.s32.totalorder %s775_s25, %s1039_s24  ;;  %p1042_p2 = scmp.lt.s32.totalorder %s1040_s17, %s1034_s14 }
 0x214   : > { %p1037_p0 = pneg %p1036_p12 }
 0x215   : > { %p1043_p3 = por %p1042_p2, %p1041_p1 }
 0x217   : > { %p1044_p5 = pnand %p1043_p3, %p1037_p0 }
 0x239   : > { %v711_v47 = vpop.xlane.xlu1 %710 }
 0x23a   : > { %v713_v48 = vsel %vm712_vm1, %v711_v47, 0.0 }
 0x23b   : > { %v714_v10 = vadd.f32 %v713_v48, %v707_v8 }
 0x285   : > { %v721_v61 = vpop.xlane.xlu0 %720 }
 0x286   : > { %v723_v9 = vsel %vm722_vm2, %v721_v61, 0.0 }
 0x287   : > { %v724_v11 = vadd.f32 %v723_v9, %v714_v10 }
 0x289   : > { %v730_v15 = vpop.xlane.xlu0 %729  ;;  %v739_v16 = vpop.xlane.xlu1 %738 }
 0x28a   : > { %v732_v14 = vsel %vm731_vm3, %v730_v15, 0.0  ;;  %v741_v21 = vsel %vm740_vm4, %v739_v16, 0.0 }
 0x28b   : > { %v733_v17 = vadd.f32 %v732_v14, %v724_v11 }
 0x28d   : > { %v742_v22 = vadd.f32 %v741_v21, %v733_v17 }
 0x28f   : > { %743 = vst [vmem:[%s346_s0] sm:$0x1] %v742_v22 }
 0x290   : > { %1047 = shalt.err (!%p1044_p5)
}
 0x291   : > { %s1048_s30 = scalar_lea.hbm %s772_s16, 16  ;;  %s1052_s26 = scalar_lea.hbm %s1429_s8, 32 }
 0x292   : > { %p1049_p6 = scmp.ne.s32.totalorder %s772_s16, %s1048_s30  ;;  %p1053_p4 = scmp.lt.s32.totalorder %s772_s16, %s1429_s8 }
 0x293   : > { %p1054_p13 = scmp.lt.s32.totalorder %s1052_s26, %s1048_s30 }
 0x294   : > { %p1050_p7 = pnand %p1049_p6, %p1226_p9 }
 0x295   : > { %p1055_p8 = por %p1054_p13, %p1053_p4 }
 0x296   : > { %p1051_p10 = pneg %p1050_p7 }
 0x298   : > { %p1056_p11 = pnand %p1055_p8, %p1051_p10 }
 0x29a   : > { %1059 = shalt.err (!%p1056_p11)
}
 0x29b   : > { %896 = dma.vmem_to_hbm [thread:$0]  (%p1226_p9), %s775_s25, 16, %s772_s16, %s749_s12  }
 0x29c PF: > { %s786_s22 = sand.u32 1, %s1098_s27   ;;  %p1441_p12 = scmp.ne.s32.totalorder %s1437_s20, 0 }
 0x29d   : > { %p1442_p0 = scmp.ge.s32.totalorder %s1118_s10, 2  ;;  %s787_s21 = scalar_lea.sflag [#allocation5], %s786_s22 }
 0x29f   : > { %p904_p1 = pnand %p1442_p0, %p1441_p12 }
 0x2a1   : > { %p905_p2 = pneg %p904_p1 }
 0x2a3   : > { %1089 = dma.done.wait (%p905_p2), %s787_s21, 16  }
 0x2a4   : > { %1091 = vsyncadd (%p905_p2), %s787_s21, 4294967280  ;;  %s795_s14 = scalar_lea.sflag [#allocation8], %s786_s22 }
 0x2a5   : > { %1093 = dma.done.wait (%p905_p2), %s795_s14, 16  }
 0x2a6   : > { %1095 = vsyncadd (%p905_p2), %s795_s14, 4294967280  ;;  %s28_s10 = sadd.s32 1, %s1118_s10   ;;  %s1443_s18 = sld [smem:[#allocation12_spill]] }
 0x2a7   : > { %p25_p3 = scmp.ge.s32.totalorder %s28_s10, 4   ;;  %s1444_s27 = smov %s1102_s28 }
 0x2a8   : > { %s1445_s28 = smov %s1106_s29  ;;  %s1446_s29 = smov %s1231_s19 }
 0x2a9   : > { %s1447_s30 = smov %s1114_s9  ;;  %27 = sbr.rel (!%p25_p3) target bundleno = 10 (0xa), region = 118 }
 0x2ac   : > { %s1448_s9 = smov %s1443_s18 }
 0x2ae   :  { %799 = vsyncpa [#allocation4], 1 }
 0x2af   :  { %801 = vsyncpa [#allocation4 + $0x1], 1 }
 0x2b0   :  { %802 = vsyncpa [#allocation5], 1 }
 0x2b1   :  { %804 = vsyncpa [#allocation5 + $0x1], 1 }
 0x2b2   :  { %805 = vsyncpa [#allocation8], 1 }
 0x2b3   :  { %807 = vsyncpa [#allocation8 + $0x1], 1 }

</bundles_post_ra>
